<compile_context>
chip_gen: v5e
topology: v5e:2x2
jax: 0.10.0
libtpu: 0.0.40
codegen_flags: <defaults>
</compile_context>

<pallas_src>
import numpy as np
import jax
import jax.numpy as jnp
from jax.experimental import pallas as pl
from jax.experimental.pallas import tpu as pltpu

NFEATURES = 1   # len(vocab) with vocab = ['.']
NCLASSES = 1
NHIDDEN = 64    # module default


def rnn_kernel(ids_ref,            # (T,) int32 in SMEM
               h0_ref,             # (1, H)  VMEM
               wT_ref,             # (H, H)  VMEM  == W^T
               uT_ref,             # (F, H)  VMEM  == U^T
               vT_ref,             # (H, C)  VMEM  == V^T
               h_out_ref,          # (1, H)  out
               seq_out_ref,        # (T, C)  out
               hs_scr):            # (T, H)  VMEM scratch: stacked hidden states
    T, _ = seq_out_ref.shape
    F = uT_ref.shape[0]

    wT = wT_ref[...]               # loop-invariant weights, kept in vregs
    h = h0_ref[...]                # (1, H) row-vector hidden state (value-carried)

    # With a single-symbol vocab (F == 1) the input contribution U @ onehot(ids[t])
    # is the same constant row every step -> hoist it out of the recurrence.
    u_const = uT_ref[...] if F == 1 else None

    for t in range(T):             # T is static -> fully unrolled, straight-line code
        if F == 1:
            u_t = u_const
        else:
            # General case: direct row gather of U^T replaces the one-hot matmul.
            u_t = uT_ref[pl.ds(ids_ref[t], 1), :]
        h = jnp.tanh(jnp.dot(h, wT, preferred_element_type=jnp.float32) + u_t)
        hs_scr[pl.ds(t, 1), :] = h                 # stash h_t; project later

    h_out_ref[...] = h
    # One (T,H) @ (H,C) matmul + single store instead of T per-step projections/stores.
    seq_out_ref[...] = jnp.dot(hs_scr[...], vT_ref[...],
                               preferred_element_type=jnp.float32)


def rnn_forward(h0_col, ids, W, U, V):
    """h0_col: (H, 1); ids: (T,) int; W: (H,H); U: (H,F); V: (C,H)."""
    H = W.shape[0]
    F = U.shape[1]
    C = V.shape[0]
    T = ids.shape[0]

    h0_row = h0_col.T.astype(jnp.float32)   # (1, H)
    wT = W.T.astype(jnp.float32)            # (H, H)
    uT = U.T.astype(jnp.float32)            # (F, H)
    vT = V.T.astype(jnp.float32)            # (H, C)
    ids = ids.astype(jnp.int32)

    h_row, seq_out = pl.pallas_call(
        rnn_kernel,
        out_shape=(
            jax.ShapeDtypeStruct((1, H), jnp.float32),
            jax.ShapeDtypeStruct((T, C), jnp.float32),
        ),
        in_specs=[
            pl.BlockSpec(memory_space=pltpu.MemorySpace.SMEM),   # ids
            pl.BlockSpec(memory_space=pltpu.MemorySpace.VMEM),   # h0 row
            pl.BlockSpec(memory_space=pltpu.MemorySpace.VMEM),   # W^T
            pl.BlockSpec(memory_space=pltpu.MemorySpace.VMEM),   # U^T
            pl.BlockSpec(memory_space=pltpu.MemorySpace.VMEM),   # V^T
        ],
        out_specs=(
            pl.BlockSpec(memory_space=pltpu.MemorySpace.VMEM),   # final hidden (row)
            pl.BlockSpec(memory_space=pltpu.MemorySpace.VMEM),   # seq outputs
        ),
        scratch_shapes=[pltpu.VMEM((T, H), jnp.float32)],
    )(ids, h0_row, wT, uT, vT)

    return h_row.T, seq_out                 # (H, 1), (T, C) to match PyTorch shapes


def rnn_reference(h0_col, ids, W, U, V):
    h = np.asarray(h0_col, dtype=np.float64)
    Wn, Un, Vn = (np.asarray(a, dtype=np.float64) for a in (W, U, V))
    outs = []
    for i in np.asarray(ids):
        x = np.zeros((Un.shape[1], 1), dtype=np.float64)
        x[int(i)] = 1.0
        h = np.tanh(Wn @ h + Un @ x)
        outs.append((Vn @ h).reshape(-1))
    return h, np.stack(outs, axis=0)


if __name__ == "__main__":
    key = jax.random.PRNGKey(0)
    k_u, k_v, k_h = jax.random.split(key, 3)

    H, F, C = NHIDDEN, NFEATURES, NCLASSES
    T = 8  # sequence length

    # deterministic parameters (module __init__: W = I, U/V ~ N(0, 0.01^2))
    W = jnp.eye(H, dtype=jnp.float32)
    U = 0.01 * jax.random.normal(k_u, (H, F), dtype=jnp.float32)
    V = 0.01 * jax.random.normal(k_v, (C, H), dtype=jnp.float32)

    h0 = 0.1 * jax.random.normal(k_h, (H, 1), dtype=jnp.float32)
    ids = jnp.zeros((T,), dtype=jnp.int32)  # vocab has a single symbol '.'

    h_final, seq_outputs = rnn_forward(h0, ids, W, U, V)
    jax.block_until_ready((h_final, seq_outputs))

    h_ref, seq_ref = rnn_reference(h0, ids, W, U, V)
    np.testing.assert_allclose(np.asarray(h_final), h_ref, rtol=1e-5, atol=1e-5)
    np.testing.assert_allclose(np.asarray(seq_outputs), seq_ref, rtol=1e-5, atol=1e-5)

    assert h_final.shape == (H, 1)
    assert seq_outputs.shape == (T, C)
    print("KERNEL_OK")
</pallas_src>

<mosaic_0001>
module attributes {stable_mosaic.version = 11 : i64} {
  func.func @rnn_kernel(%arg0: memref<8xi32, #tpu.memory_space<smem>>, %arg1: memref<1x64xf32, #tpu.memory_space<vmem>>, %arg2: memref<64x64xf32, #tpu.memory_space<vmem>>, %arg3: memref<1x64xf32, #tpu.memory_space<vmem>>, %arg4: memref<64x1xf32, #tpu.memory_space<vmem>>, %arg5: memref<1x64xf32, #tpu.memory_space<vmem>>, %arg6: memref<8x1xf32, #tpu.memory_space<vmem>>, %arg7: memref<8x64xf32, #tpu.memory_space<vmem>>) attributes {dimension_semantics = [], scalar_prefetch = 0 : i64, scratch_operands = 1 : i64, tpu.core_type = #tpu.core_type<tc>} {
    %c0 = arith.constant 0 : index
    %c0_0 = arith.constant 0 : index
    %0 = vector.load %arg2[%c0, %c0_0] : memref<64x64xf32, #tpu.memory_space<vmem>>, vector<64x64xf32>
    %c0_1 = arith.constant 0 : index
    %c0_2 = arith.constant 0 : index
    %1 = vector.load %arg1[%c0_1, %c0_2] : memref<1x64xf32, #tpu.memory_space<vmem>>, vector<1x64xf32>
    %c0_3 = arith.constant 0 : index
    %c0_4 = arith.constant 0 : index
    %2 = vector.load %arg3[%c0_3, %c0_4] : memref<1x64xf32, #tpu.memory_space<vmem>>, vector<1x64xf32>
    %cst = arith.constant dense<0.000000e+00> : vector<1x64xf32>
    %3 = tpu.matmul %1, %0, %cst {dimension_numbers = #tpu.dot_dimension_numbers<[1], [0], [0], [1], [0, 0, 1, 1], [], []>} : vector<1x64xf32>, vector<64x64xf32>, vector<1x64xf32> -> vector<1x64xf32>
    %4 = arith.addf %3, %2 : vector<1x64xf32>
    %5 = math.tanh %4 : vector<1x64xf32>
    %c0_5 = arith.constant 0 : index
    %c0_6 = arith.constant 0 : index
    %6 = vector.load %arg7[%c0_5, %c0_6] : memref<8x64xf32, #tpu.memory_space<vmem>>, vector<1x64xf32>
    tpu.vector_store %arg7[%c0_5, %c0_6], %5 {strides = array<i32>} : memref<8x64xf32, #tpu.memory_space<vmem>>, vector<1x64xf32>,
    %cst_7 = arith.constant dense<0.000000e+00> : vector<1x64xf32>
    %7 = tpu.matmul %5, %0, %cst_7 {dimension_numbers = #tpu.dot_dimension_numbers<[1], [0], [0], [1], [0, 0, 1, 1], [], []>} : vector<1x64xf32>, vector<64x64xf32>, vector<1x64xf32> -> vector<1x64xf32>
    %8 = arith.addf %7, %2 : vector<1x64xf32>
    %9 = math.tanh %8 : vector<1x64xf32>
    %c1 = arith.constant 1 : index
    %c0_8 = arith.constant 0 : index
    %10 = vector.load %arg7[%c1, %c0_8] : memref<8x64xf32, #tpu.memory_space<vmem>>, vector<1x64xf32>
    tpu.vector_store %arg7[%c1, %c0_8], %9 {strides = array<i32>} : memref<8x64xf32, #tpu.memory_space<vmem>>, vector<1x64xf32>,
    %cst_9 = arith.constant dense<0.000000e+00> : vector<1x64xf32>
    %11 = tpu.matmul %9, %0, %cst_9 {dimension_numbers = #tpu.dot_dimension_numbers<[1], [0], [0], [1], [0, 0, 1, 1], [], []>} : vector<1x64xf32>, vector<64x64xf32>, vector<1x64xf32> -> vector<1x64xf32>
    %12 = arith.addf %11, %2 : vector<1x64xf32>
    %13 = math.tanh %12 : vector<1x64xf32>
    %c2 = arith.constant 2 : index
    %c0_10 = arith.constant 0 : index
    %14 = vector.load %arg7[%c2, %c0_10] : memref<8x64xf32, #tpu.memory_space<vmem>>, vector<1x64xf32>
    tpu.vector_store %arg7[%c2, %c0_10], %13 {strides = array<i32>} : memref<8x64xf32, #tpu.memory_space<vmem>>, vector<1x64xf32>,
    %cst_11 = arith.constant dense<0.000000e+00> : vector<1x64xf32>
    %15 = tpu.matmul %13, %0, %cst_11 {dimension_numbers = #tpu.dot_dimension_numbers<[1], [0], [0], [1], [0, 0, 1, 1], [], []>} : vector<1x64xf32>, vector<64x64xf32>, vector<1x64xf32> -> vector<1x64xf32>
    %16 = arith.addf %15, %2 : vector<1x64xf32>
    %17 = math.tanh %16 : vector<1x64xf32>
    %c3 = arith.constant 3 : index
    %c0_12 = arith.constant 0 : index
    %18 = vector.load %arg7[%c3, %c0_12] : memref<8x64xf32, #tpu.memory_space<vmem>>, vector<1x64xf32>
    tpu.vector_store %arg7[%c3, %c0_12], %17 {strides = array<i32>} : memref<8x64xf32, #tpu.memory_space<vmem>>, vector<1x64xf32>,
    %cst_13 = arith.constant dense<0.000000e+00> : vector<1x64xf32>
    %19 = tpu.matmul %17, %0, %cst_13 {dimension_numbers = #tpu.dot_dimension_numbers<[1], [0], [0], [1], [0, 0, 1, 1], [], []>} : vector<1x64xf32>, vector<64x64xf32>, vector<1x64xf32> -> vector<1x64xf32>
    %20 = arith.addf %19, %2 : vector<1x64xf32>
    %21 = math.tanh %20 : vector<1x64xf32>
    %c4 = arith.constant 4 : index
    %c0_14 = arith.constant 0 : index
    %22 = vector.load %arg7[%c4, %c0_14] : memref<8x64xf32, #tpu.memory_space<vmem>>, vector<1x64xf32>
    tpu.vector_store %arg7[%c4, %c0_14], %21 {strides = array<i32>} : memref<8x64xf32, #tpu.memory_space<vmem>>, vector<1x64xf32>,
    %cst_15 = arith.constant dense<0.000000e+00> : vector<1x64xf32>
    %23 = tpu.matmul %21, %0, %cst_15 {dimension_numbers = #tpu.dot_dimension_numbers<[1], [0], [0], [1], [0, 0, 1, 1], [], []>} : vector<1x64xf32>, vector<64x64xf32>, vector<1x64xf32> -> vector<1x64xf32>
    %24 = arith.addf %23, %2 : vector<1x64xf32>
    %25 = math.tanh %24 : vector<1x64xf32>
    %c5 = arith.constant 5 : index
    %c0_16 = arith.constant 0 : index
    %26 = vector.load %arg7[%c5, %c0_16] : memref<8x64xf32, #tpu.memory_space<vmem>>, vector<1x64xf32>
    tpu.vector_store %arg7[%c5, %c0_16], %25 {strides = array<i32>} : memref<8x64xf32, #tpu.memory_space<vmem>>, vector<1x64xf32>,
    %cst_17 = arith.constant dense<0.000000e+00> : vector<1x64xf32>
    %27 = tpu.matmul %25, %0, %cst_17 {dimension_numbers = #tpu.dot_dimension_numbers<[1], [0], [0], [1], [0, 0, 1, 1], [], []>} : vector<1x64xf32>, vector<64x64xf32>, vector<1x64xf32> -> vector<1x64xf32>
    %28 = arith.addf %27, %2 : vector<1x64xf32>
    %29 = math.tanh %28 : vector<1x64xf32>
    %c6 = arith.constant 6 : index
    %c0_18 = arith.constant 0 : index
    %30 = vector.load %arg7[%c6, %c0_18] : memref<8x64xf32, #tpu.memory_space<vmem>>, vector<1x64xf32>
    tpu.vector_store %arg7[%c6, %c0_18], %29 {strides = array<i32>} : memref<8x64xf32, #tpu.memory_space<vmem>>, vector<1x64xf32>,
    %cst_19 = arith.constant dense<0.000000e+00> : vector<1x64xf32>
    %31 = tpu.matmul %29, %0, %cst_19 {dimension_numbers = #tpu.dot_dimension_numbers<[1], [0], [0], [1], [0, 0, 1, 1], [], []>} : vector<1x64xf32>, vector<64x64xf32>, vector<1x64xf32> -> vector<1x64xf32>
    %32 = arith.addf %31, %2 : vector<1x64xf32>
    %33 = math.tanh %32 : vector<1x64xf32>
    %c7 = arith.constant 7 : index
    %c0_20 = arith.constant 0 : index
    %34 = vector.load %arg7[%c7, %c0_20] : memref<8x64xf32, #tpu.memory_space<vmem>>, vector<1x64xf32>
    tpu.vector_store %arg7[%c7, %c0_20], %33 {strides = array<i32>} : memref<8x64xf32, #tpu.memory_space<vmem>>, vector<1x64xf32>,
    %c0_21 = arith.constant 0 : index
    %c0_22 = arith.constant 0 : index
    %35 = vector.load %arg5[%c0_21, %c0_22] : memref<1x64xf32, #tpu.memory_space<vmem>>, vector<1x64xf32>
    tpu.vector_store %arg5[%c0_21, %c0_22], %33 {strides = array<i32>} : memref<1x64xf32, #tpu.memory_space<vmem>>, vector<1x64xf32>,
    %c0_23 = arith.constant 0 : index
    %c0_24 = arith.constant 0 : index
    %36 = vector.load %arg7[%c0_23, %c0_24] : memref<8x64xf32, #tpu.memory_space<vmem>>, vector<8x64xf32>
    %c0_25 = arith.constant 0 : index
    %c0_26 = arith.constant 0 : index
    %37 = vector.load %arg4[%c0_25, %c0_26] : memref<64x1xf32, #tpu.memory_space<vmem>>, vector<64x1xf32>
    %cst_27 = arith.constant dense<0.000000e+00> : vector<8x1xf32>
    %38 = tpu.matmul %36, %37, %cst_27 {dimension_numbers = #tpu.dot_dimension_numbers<[1], [0], [0], [1], [0, 0, 1, 1], [], []>} : vector<8x64xf32>, vector<64x1xf32>, vector<8x1xf32> -> vector<8x1xf32>
    %c0_28 = arith.constant 0 : index
    %c0_29 = arith.constant 0 : index
    %39 = vector.load %arg6[%c0_28, %c0_29] : memref<8x1xf32, #tpu.memory_space<vmem>>, vector<8x1xf32>
    tpu.vector_store %arg6[%c0_28, %c0_29], %38 {strides = array<i32>} : memref<8x1xf32, #tpu.memory_space<vmem>>, vector<8x1xf32>,
    return
  }
}

</mosaic_0001>

<bundles_post_ra>
// kernel: tpu_custom_call.1
= control target key start
LH: loop header
LB: loop body
LE: loop exit
PB: predicated region body
PF: predicated region fallthrough
CT: control target
= control target key end

     0   :  { %12 = vsyncpa [#allocation6], 0  ;;  %s532_s0 = inlined_call_operand.vmem [shape: s32[8], index: 0, kind: input, shape index: {}]   ;;  %s533_s1 = inlined_call_operand.hbm [shape: f32[1,64], index: 1, kind: input, shape index: {}]   ;;  %s534_s2 = inlined_call_operand.vmem [shape: f32[64,64], index: 2, kind: input, shape index: {}]   ;;  %s535_s3 = inlined_call_operand.vmem [shape: f32[1,64], index: 3, kind: input, shape index: {}]   ;;  %s536_s4 = inlined_call_operand.vmem [shape: f32[64,1], index: 4, kind: input, shape index: {}]   ;;  %s537_s5 = inlined_call_operand.hbm [shape: f32[1,64], index: 5, kind: output, shape index: {0}]   ;;  %s538_s6 = inlined_call_operand.vmem [shape: f32[8,1], index: 6, kind: output, shape index: {1}]  }
   0x1   :  { %13 = vsyncpa [#allocation4], 0 }
   0x2   :  { %14 = vsyncpa [#allocation5], 0  ;;  %s20_s23 = sshll.u32 %s532_s0, 4  ;;  %s29_s26 = sshll.u32 %s533_s1, 4  ;;  %s21_s23 = int_to_ptr.vmem [resolvable:$true] %s20_s23  ;;  %s30_s26 = int_to_ptr.hbm [resolvable:$true] %s29_s26 }
   0x3   :  { %s413_s27 = smov [#allocation3]   ;;  %s414_s28 = smov [#allocation7]  }
   0x4   :  { %23 = dma.vmem_to_smem %s21_s23, 16, %s413_s27, [#allocation6]  }
   0x5   :  { %s31_s29 = sshll.u32 %s414_s28, 4  ;;  %s32_s29 = int_to_ptr.vmem [resolvable:$true] %s31_s29 }
   0x6   :  { %34 = dma.hbm_to_vmem [thread:$0]  %s30_s26, 16, %s32_s29, [#allocation4]  }
   0x7   :  { %407 = dma.done.wait [#allocation6], 16  }
   0x8   :  { %408 = vsyncadd [#allocation6], 4294967280 }
   0x9   :  { %409 = dma.done.wait [#allocation4], 16  }
   0xa   :  { %410 = vsyncadd [#allocation4], 4294967280 }
   0xb   :  { %49 = sfence }
   0xc   :  { %v57_v0 = vld [vmem:[%s534_s2 + $0x38] sm:$0xff]  ;;  %v56_v1 = vld [vmem:[%s534_s2 + $0x30] sm:$0xff]  ;;  %v55_v2 = vld [vmem:[%s534_s2 + $0x28] sm:$0xff]  ;;  %vm60_vm0 = vcmask 523264   ;;  %vm85_vm1 = vcmask 516096   ;;  %s415_s10 = smov [#allocation8]  }
   0xd   :  { %72 = vmatpush.msra.mxu0 %v57_v0  ;;  %98 = vmatpush.msra.mxu1 %v57_v0  ;;  %v54_v3 = vld [vmem:[%s534_s2 + $0x20] sm:$0xff]  ;;  %v53_v4 = vld [vmem:[%s534_s2 + $0x18] sm:$0xff]  ;;  %v52_v5 = vld [vmem:[%s534_s2 + $0x10] sm:$0xff]  ;;  %s302_s11 = sshll.u32 %s415_s10, 4  ;;  %s304_s14 = sshll.u32 %s537_s5, 4  ;;  %vm295_vm2 = vcmask 7168   ;;  %s303_s11 = int_to_ptr.vmem [resolvable:$true] %s302_s11  ;;  %s305_s14 = int_to_ptr.hbm [resolvable:$true] %s304_s14 }
   0xe   :  { %123 = vmatpush.msra.mxu2 %v57_v0  ;;  %148 = vmatpush.msra.mxu3 %v57_v0  ;;  %v51_v6 = vld [vmem:[%s534_s2 + $0x8] sm:$0xff]  ;;  %v50_v7 = vld [vmem:[%s534_s2] sm:$0xff]  ;;  %v271_v31 = vld [vmem:[%s536_s4 + $0x38] sm:$0xff] }
   0xf   :  { %73 = vmatpush.msra.mxu0 %v56_v1  ;;  %99 = vmatpush.msra.mxu1 %v56_v1  ;;  %v58_v8 = vld [vmem:[#allocation7] sm:$0x1]  ;;  %v59_v9 = vld [vmem:[%s535_s3] sm:$0x1]  ;;  %v270_v32 = vld [vmem:[%s536_s4 + $0x30] sm:$0xff] }
  0x10   :  { %124 = vmatpush.msra.mxu2 %v56_v1  ;;  %149 = vmatpush.msra.mxu3 %v56_v1  ;;  %v269_v33 = vld [vmem:[%s536_s4 + $0x28] sm:$0xff]  ;;  %v268_v34 = vld [vmem:[%s536_s4 + $0x20] sm:$0xff]  ;;  %v267_v35 = vld [vmem:[%s536_s4 + $0x18] sm:$0xff] }
  0x11   :  { %74 = vmatpush.msra.mxu0 %v55_v2  ;;  %100 = vmatpush.msra.mxu1 %v55_v2  ;;  %v266_v36 = vld [vmem:[%s536_s4 + $0x10] sm:$0xff]  ;;  %v265_v37 = vld [vmem:[%s536_s4 + $0x8] sm:$0xff]  ;;  %v264_v38 = vld [vmem:[%s536_s4] sm:$0xff] }
  0x12   :  { %125 = vmatpush.msra.mxu2 %v55_v2  ;;  %150 = vmatpush.msra.mxu3 %v55_v2 }
  0x13   :  { %75 = vmatpush.msra.mxu0 %v54_v3  ;;  %101 = vmatpush.msra.mxu1 %v54_v3 }
  0x14   :  { %126 = vmatpush.msra.mxu2 %v54_v3  ;;  %151 = vmatpush.msra.mxu3 %v54_v3 }
  0x15   :  { %76 = vmatpush.msra.mxu0 %v53_v4  ;;  %102 = vmatpush.msra.mxu1 %v53_v4 }
  0x16   :  { %127 = vmatpush.msra.mxu2 %v53_v4  ;;  %152 = vmatpush.msra.mxu3 %v53_v4 }
  0x17   :  { %77 = vmatpush.msra.mxu0 %v52_v5  ;;  %103 = vmatpush.msra.mxu1 %v52_v5 }
  0x18   :  { %128 = vmatpush.msra.mxu2 %v52_v5  ;;  %153 = vmatpush.msra.mxu3 %v52_v5 }
  0x19   :  { %78 = vmatpush.msra.mxu0 %v51_v6  ;;  %104 = vmatpush.msra.mxu1 %v51_v6 }
  0x1a   :  { %129 = vmatpush.msra.mxu2 %v51_v6  ;;  %154 = vmatpush.msra.mxu3 %v51_v6 }
  0x1b   :  { %79 = vmatpush.msra.mxu0 %v50_v7  ;;  %105 = vmatpush.msra.mxu1 %v50_v7 }
  0x1c   :  { %319 = vmatmul.msk.f32.vlgmr.msra.gmra.mxu0 %vm60_vm0, %v58_v8  ;;  %130 = vmatpush.msra.mxu2 %v50_v7 }
  0x1d   :  { %155 = vmatpush.msra.mxu3 %v50_v7  ;;  %173 = vmatpush.msrb.mxu0 %v57_v0 }
  0x1e   :  { %198 = vmatpush.msrb.mxu1 %v57_v0  ;;  %223 = vmatpush.msrb.mxu2 %v57_v0 }
  0x1f   :  { %174 = vmatpush.msrb.mxu0 %v56_v1  ;;  %248 = vmatpush.msrb.mxu3 %v57_v0 }
  0x20   :  { %199 = vmatpush.msrb.mxu1 %v56_v1  ;;  %224 = vmatpush.msrb.mxu2 %v56_v1 }
  0x21   :  { %175 = vmatpush.msrb.mxu0 %v55_v2  ;;  %249 = vmatpush.msrb.mxu3 %v56_v1 }
  0x22   :  { %200 = vmatpush.msrb.mxu1 %v55_v2  ;;  %225 = vmatpush.msrb.mxu2 %v55_v2 }
  0x23   :  { %176 = vmatpush.msrb.mxu0 %v54_v3  ;;  %250 = vmatpush.msrb.mxu3 %v55_v2 }
  0x24   :  { %201 = vmatpush.msrb.mxu1 %v54_v3  ;;  %226 = vmatpush.msrb.mxu2 %v54_v3 }
  0x25   :  { %177 = vmatpush.msrb.mxu0 %v53_v4  ;;  %251 = vmatpush.msrb.mxu3 %v54_v3 }
  0x26   :  { %202 = vmatpush.msrb.mxu1 %v53_v4  ;;  %227 = vmatpush.msrb.mxu2 %v53_v4 }
  0x27   :  { %178 = vmatpush.msrb.mxu0 %v52_v5  ;;  %252 = vmatpush.msrb.mxu3 %v53_v4 }
  0x28   :  { %203 = vmatpush.msrb.mxu1 %v52_v5  ;;  %228 = vmatpush.msrb.mxu2 %v52_v5 }
  0x29   :  { %179 = vmatpush.msrb.mxu0 %v51_v6  ;;  %253 = vmatpush.msrb.mxu3 %v52_v5 }
  0x2a   :  { %204 = vmatpush.msrb.mxu1 %v51_v6  ;;  %229 = vmatpush.msrb.mxu2 %v51_v6 }
  0x2b   :  { %180 = vmatpush.msrb.mxu0 %v50_v7  ;;  %254 = vmatpush.msrb.mxu3 %v51_v6 }
  0x2c   :  { %205 = vmatpush.msrb.mxu1 %v50_v7  ;;  %230 = vmatpush.msrb.mxu2 %v50_v7 }
  0x2d   :  { %255 = vmatpush.msrb.mxu3 %v50_v7  ;;  %283 = vmatpush.msra.mxu0 %v271_v31 }
  0x2f   :  { %284 = vmatpush.msra.mxu0 %v270_v32 }
  0x31   :  { %285 = vmatpush.msra.mxu0 %v269_v33 }
  0x33   :  { %286 = vmatpush.msra.mxu0 %v268_v34 }
  0x35   :  { %287 = vmatpush.msra.mxu0 %v267_v35 }
  0x37   :  { %288 = vmatpush.msra.mxu0 %v266_v36 }
  0x39   :  { %289 = vmatpush.msra.mxu0 %v265_v37 }
  0x3b   :  { %290 = vmatpush.msra.mxu0 %v264_v38 }
  0x99   :  { %v81_v10 = vpop.f32.mrf.mxu0 }
  0x9a   :  { %v82_v11 = vadd.f32 %v81_v10, %v59_v9 }
  0x9c   :  { %331 = vtanh.f32 %v82_v11 }
  0xa2   :  { %v332_v12 = vpop.eup %331 }
  0xa3   :  { %86 = vst.msk [vmem:[#allocation2] sm:$0x1] %vm85_vm1, %v332_v12  ;;  %320 = vmatmul.msk.f32.vlgmr.msra.gmra.mxu1 %vm60_vm0, %v332_v12 }
 0x120   :  { %v107_v13 = vpop.f32.mrf.mxu1 }
 0x121   :  { %v108_v14 = vadd.f32 %v107_v13, %v59_v9 }
 0x123   :  { %333 = vtanh.f32 %v108_v14 }
 0x129   :  { %v334_v15 = vpop.eup %333 }
 0x12a   :  { %111 = vst.msk [vmem:[#allocation2 + $0x1] sm:$0x1] %vm85_vm1, %v334_v15  ;;  %321 = vmatmul.msk.f32.vlgmr.msra.gmra.mxu2 %vm60_vm0, %v334_v15 }
 0x1ad   :  { %v132_v16 = vpop.f32.mrf.mxu2 }
 0x1ae   :  { %v133_v17 = vadd.f32 %v132_v16, %v59_v9 }
 0x1b0   :  { %335 = vtanh.f32 %v133_v17 }
 0x1b6   :  { %v336_v18 = vpop.eup %335 }
 0x1b7   :  { %136 = vst.msk [vmem:[#allocation2 + $0x2] sm:$0x1] %vm85_vm1, %v336_v18  ;;  %322 = vmatmul.msk.f32.vlgmr.msra.gmra.mxu3 %vm60_vm0, %v336_v18 }
 0x23a   :  { %v157_v19 = vpop.f32.mrf.mxu3 }
 0x23b   :  { %v158_v20 = vadd.f32 %v157_v19, %v59_v9 }
 0x23d   :  { %337 = vtanh.f32 %v158_v20 }
 0x243   :  { %v338_v21 = vpop.eup %337 }
 0x244   :  { %161 = vst.msk [vmem:[#allocation2 + $0x3] sm:$0x1] %vm85_vm1, %v338_v21  ;;  %323 = vmatmul.msk.f32.vlgmr.msrb.gmra.mxu0 %vm60_vm0, %v338_v21 }
 0x2c1   :  { %v182_v22 = vpop.f32.mrf.mxu0 }
 0x2c2   :  { %v183_v23 = vadd.f32 %v182_v22, %v59_v9 }
 0x2c4   :  { %339 = vtanh.f32 %v183_v23 }
 0x2ca   :  { %v340_v24 = vpop.eup %339 }
 0x2cb   :  { %186 = vst.msk [vmem:[#allocation2 + $0x4] sm:$0x1] %vm85_vm1, %v340_v24  ;;  %324 = vmatmul.msk.f32.vlgmr.msrb.gmra.mxu1 %vm60_vm0, %v340_v24 }
 0x348   :  { %v207_v25 = vpop.f32.mrf.mxu1 }
 0x349   :  { %v208_v26 = vadd.f32 %v207_v25, %v59_v9 }
 0x34b   :  { %341 = vtanh.f32 %v208_v26 }
 0x351   :  { %v342_v27 = vpop.eup %341 }
 0x352   :  { %211 = vst.msk [vmem:[#allocation2 + $0x5] sm:$0x1] %vm85_vm1, %v342_v27  ;;  %325 = vmatmul.msk.f32.vlgmr.msrb.gmra.mxu2 %vm60_vm0, %v342_v27 }
 0x3d5   :  { %v232_v28 = vpop.f32.mrf.mxu2 }
 0x3d6   :  { %v233_v29 = vadd.f32 %v232_v28, %v59_v9 }
 0x3d8   :  { %343 = vtanh.f32 %v233_v29 }
 0x3de   :  { %v344_v30 = vpop.eup %343 }
 0x3df   :  { %236 = vst.msk [vmem:[#allocation2 + $0x6] sm:$0x1] %vm85_vm1, %v344_v30  ;;  %326 = vmatmul.msk.f32.vlgmr.msrb.gmra.mxu3 %vm60_vm0, %v344_v30 }
 0x462   :  { %v257_v39 = vpop.f32.mrf.mxu3 }
 0x463   :  { %v258_v40 = vadd.f32 %v257_v39, %v59_v9 }
 0x465   :  { %345 = vtanh.f32 %v258_v40 }
 0x46b   :  { %v346_v41 = vpop.eup %345 }
 0x46c   :  { %261 = vst.msk [vmem:[#allocation2 + $0x7] sm:$0x1] %vm85_vm1, %v346_v41 }
 0x46d   :  { %262 = vst.msk [vmem:[#allocation8] sm:$0x1] %vm85_vm1, %v346_v41 }
 0x46e   :  { %307 = dma.vmem_to_hbm [thread:$0]  %s303_s11, 16, %s305_s14, [#allocation5]  }
 0x473   :  { %v263_v42 = vld [vmem:[#allocation2] sm:$0xff] }
 0x474   :  { %327 = vmatmul.msk.f32.vlgmr.msra.gmra.mxu0 %vm60_vm0, %v263_v42 }
 0x4f1   :  { %v292_v43 = vpop.f32.mrf.mxu0 }
 0x4f2   :  { %296 = vst.msk [vmem:[%s538_s6] sm:$0xff] %vm295_vm2, %v292_v43 }
 0x4f3   :  { %411 = dma.done.wait [#allocation5], 16  }
 0x4f4   :  { %412 = vsyncadd [#allocation5], 4294967280 }
 0x4f5   :  { %316 = vsyncpa [#allocation4], 1 }
 0x4f6   :  { %317 = vsyncpa [#allocation5], 1 }
 0x4f7   :  { %318 = vsyncpa [#allocation6], 1 }

</bundles_post_ra>
